<compile_context>
chip_gen: v5e
topology: v5e:2x2
jax: 0.10.0
libtpu: 0.0.40
codegen_flags: <defaults>
</compile_context>

<pallas_src>
import functools
import math

import numpy as np
import jax
import jax.numpy as jnp
from jax.experimental import pallas as pl
from jax.experimental.pallas import tpu as pltpu

SCALE_BOUND = 0.11          # GaussianConditional default scale_bound
LIKELIHOOD_BOUND = 1e-9     # EntropyModel default likelihood_bound
_INV_SQRT2 = 1.0 / math.sqrt(2.0)
_SQRT_2_OVER_PI = math.sqrt(2.0 / math.pi)
_EPS_PROB = float(np.finfo(np.float32).eps)   # torch clamp_probs eps for f32
_LANE = 128
_SUBLANE = 8


def _gc_kernel(params_ref, seed_ref, *refs, training, has_means,
               uniform_inputs, approx_lik):
    """One (block_rows, 128) tile of the GaussianConditional forward.

    refs layout: x, scales, [means], [u1, u2], out, lik
    params_ref (SMEM f32[2]): [delta, temperature];  seed_ref (SMEM i32[1]).
    """
    rit = iter(refs)
    x_ref = next(rit)
    s_ref = next(rit)
    m_ref = next(rit) if has_means else None
    u1_ref = u2_ref = None
    if training and uniform_inputs:
        u1_ref = next(rit)
        u2_ref = next(rit)
    out_ref = next(rit)
    lik_ref = next(rit)

    delta = params_ref[0]
    inv_delta = 1.0 / delta          # scalar divide, negligible
    x = x_ref[...]
    scales = s_ref[...]
    means = m_ref[...] if has_means else None

    if training:
        # Quantizator_SGA, mode='training' (Stochastic Gumbel Annealing).
        temperature = params_ref[1]
        inv_t = 1.0 / temperature
        z = x * inv_delta
        zf = jnp.floor(z)
        zc = jnp.ceil(z)
        eps = 1e-5
        i1 = jnp.clip(z - zf, -1.0 + eps, 1.0 - eps)
        i2 = jnp.clip(zc - z, -1.0 + eps, 1.0 - eps)
        # a2 - a1 with a_k = atanh(i_k) = 0.5*log((1+i_k)/(1-i_k)).
        # Split into two EUP logs (no VPU divide).
        a_diff = 0.5 * (jnp.log((1.0 + i2) * (1.0 - i1))
                        - jnp.log((1.0 - i2) * (1.0 + i1)))

        if uniform_inputs:
            u1 = jnp.clip(u1_ref[...], _EPS_PROB, 1.0 - _EPS_PROB)
            u2 = jnp.clip(u2_ref[...], _EPS_PROB, 1.0 - _EPS_PROB)
        else:
            # On-chip hardware PRNG (real TPU only; saves two HBM streams on v5e).
            # TODO(synk): tiling-dependent stream (seed mixes in program_id).
            pltpu.prng_seed(seed_ref[0], pl.program_id(0))

            def _draw_uniform():
                bits = pltpu.prng_random_bits(x.shape)
                if bits.dtype != jnp.uint32:
                    bits = pltpu.bitcast(bits, jnp.uint32)
                # OR 23 random bits into the mantissa of 1.0f -> [1,2), subtract 1.
                mant = jnp.bitwise_or(jnp.bitwise_and(bits, jnp.uint32(0x7FFFFF)),
                                      jnp.uint32(0x3F800000))
                u = pltpu.bitcast(mant, jnp.float32) - 1.0
                return jnp.maximum(u, _EPS_PROB)   # upper bound already <= 1 - 2^-23

            u1 = _draw_uniform()
            u2 = _draw_uniform()

        lu1 = jnp.log(u1)
        lu2 = jnp.log(u2)
        # g1 - g2 with g_k = -log(-log(u_k)): two EUP logs, no divide.
        g_diff = jnp.log(-lu2) - jnp.log(-lu1)
        # Two stacked 2-way softmaxes collapse to one sigmoid of the logit diff:
        #   r1 = sigmoid(((a2 - a1)/T + g1 - g2)/T) = weight of the floor category.
        arg = (a_diff * inv_t + g_diff) * inv_t
        r1 = 0.5 + 0.5 * jnp.tanh(0.5 * arg)      # sigmoid via EUP tanh (no divide)
        outputs = (zc - (zc - zf) * r1) * delta   # zf*r1 + zc*(1-r1), scaled back
    else:
        base = x - means if has_means else x
        outputs = jnp.round(base * inv_delta) * delta
        if has_means:
            outputs = outputs + means

    out_ref[...] = outputs

    # _likelihood: Normal(0, max(scales, 0.11)) CDF difference; the +1 constants cancel.
    values = outputs - means if has_means else outputs
    sc = jnp.maximum(scales, SCALE_BOUND)
    v = jnp.abs(values)
    half = 0.5 * delta
    if approx_lik:
        # tanh-based Phi approximation (EUP-friendly); ~1e-3 abs error per CDF.
        inv_sc = 1.0 / sc
        yh = (v + half) * inv_sc
        yl = (v - half) * inv_sc

        def _phi2m1(t):   # 2*Phi(t) - 1
            return jnp.tanh(_SQRT_2_OVER_PI * (t + 0.044715 * (t * t * t)))

        lik = 0.5 * (_phi2m1(yh) - _phi2m1(yl))
    else:
        inv = _INV_SQRT2 / sc
        lik = 0.5 * (jax.lax.erf((v + half) * inv) - jax.lax.erf((v - half) * inv))
    lik_ref[...] = jnp.maximum(lik, LIKELIHOOD_BOUND)


@functools.partial(jax.jit, static_argnames=('mode', 'total_it', 'block_rows',
                                             'use_device_prng', 'approx_likelihood'))
def gaussian_conditional_forward(inputs, scales, delta=1.0, means=None,
                                 mode='training', it=0, total_it=2000,
                                 uniforms=None, seed=0, block_rows=1024,
                                 use_device_prng=False, approx_likelihood=False):
    """GaussianConditional.forward. Returns (outputs, likelihood, delta).

    Gumbel-uniform source (training mode only):
      * uniforms=(u1, u2): use the provided arrays (bit-comparable to the reference).
      * uniforms=None, use_device_prng=False (default): draw with jax.random inside
        the jitted wrapper (works on any backend, incl. interpret mode).
      * uniforms=None, use_device_prng=True: draw on-chip with the TPU hardware PRNG
        (real TPU hardware only; saves two HBM streams — preferred on v5e).
    """
    orig_shape = inputs.shape
    n = int(np.prod(orig_shape))
    tile_elems = _SUBLANE * _LANE
    padded = (n % tile_elems) != 0
    if padded:
        rows = -(-n // _LANE)
        rows = -(-rows // _SUBLANE) * _SUBLANE      # pad only to the next (8,128) tile
    else:
        rows = n // _LANE
    total = rows * _LANE

    training = (mode == 'training')
    has_means = means is not None
    gen_uniforms = training and (uniforms is None) and (not use_device_prng)
    uniform_inputs = training and ((uniforms is not None) or gen_uniforms)

    # Block sizing: big lane-dense tiles; cap when many streams are live so a
    # v6e-tuned tile still double-buffers inside v5e/v7x VMEM budgets.
    cap = 2048 if (has_means and uniform_inputs) else 4096
    block = max(_SUBLANE, (min(block_rows, cap, rows) // _SUBLANE) * _SUBLANE)
    grid = (pl.cdiv(rows, block),)   # ragged last block is legal (block % (8,128) == 0)

    def prep(a):
        flat = jnp.ravel(a).astype(jnp.float32)    # metadata-only when already f32
        if padded:
            flat = jnp.pad(flat, (0, total - n))
        return flat.reshape(rows, _LANE)

    operands = [prep(inputs), prep(scales)]
    if has_means:
        operands.append(prep(means))
    if uniform_inputs:
        if uniforms is not None:
            operands.append(prep(uniforms[0]))
            operands.append(prep(uniforms[1]))
        else:
            key = jax.random.PRNGKey(seed)
            k1, k2 = jax.random.split(key)
            operands.append(jax.random.uniform(k1, (rows, _LANE), jnp.float32))
            operands.append(jax.random.uniform(k2, (rows, _LANE), jnp.float32))

    if training:
        # annealed_temperature: scheme='exp0', r=1e-3, ub=0.5, lb=1e-8, t0=0.35*total
        t0 = int(total_it * 0.35)
        tau = 0.5 * jnp.exp(-1e-3 * (jnp.asarray(it, jnp.float32) - t0))
        temperature = jnp.clip(tau, 1e-8, 0.5)
    else:
        temperature = jnp.float32(1.0)

    params = jnp.stack([jnp.asarray(delta, jnp.float32),
                        jnp.asarray(temperature, jnp.float32)])
    seed_arr = jnp.asarray(seed, jnp.int32).reshape((1,))

    spec = pl.BlockSpec((block, _LANE), lambda i, *prefetch: (i, 0))
    kernel = functools.partial(_gc_kernel, training=training, has_means=has_means,
                               uniform_inputs=uniform_inputs,
                               approx_lik=approx_likelihood)

    # VMEM budget: (inputs + 2 outputs) streams x double buffer x block tile + headroom.
    n_streams = len(operands) + 2
    vmem_bytes = min(32 * 1024 * 1024,
                     n_streams * 2 * block * _LANE * 4 + (4 << 20))

    out2, lik2 = pl.pallas_call(
        kernel,
        out_shape=(jax.ShapeDtypeStruct((rows, _LANE), jnp.float32),
                   jax.ShapeDtypeStruct((rows, _LANE), jnp.float32)),
        grid_spec=pltpu.PrefetchScalarGridSpec(
            num_scalar_prefetch=2,
            grid=grid,
            in_specs=[spec] * len(operands),
            out_specs=(spec, spec)),
        compiler_params=pltpu.CompilerParams(
            dimension_semantics=("parallel",),
            vmem_limit_bytes=int(vmem_bytes)),
    )(params, seed_arr, *operands)

    if padded:
        out = out2.reshape(-1)[:n].reshape(orig_shape)
        lik = lik2.reshape(-1)[:n].reshape(orig_shape)
    else:
        out = out2.reshape(orig_shape)
        lik = lik2.reshape(orig_shape)
    return out, lik, jnp.asarray(delta, jnp.float32)


# ---------------- pure-JAX references (for sanity checking) -----------------
def _annealed_temperature_np(it, total_it):
    t0 = int(total_it * 0.35)
    tau = 0.5 * np.exp(-1e-3 * (it - t0))
    return float(np.minimum(np.maximum(tau, 1e-8), 0.5))


def _ref_likelihood(outputs, scales, delta, means):
    values = outputs - means if means is not None else outputs
    sc = jnp.maximum(scales, SCALE_BOUND)
    v = jnp.abs(values)
    half = delta * 0.5
    cdf = lambda t: 0.5 * (1.0 + jax.scipy.special.erf(t / (sc * jnp.sqrt(2.0))))
    return jnp.maximum(cdf(v + half) - cdf(v - half), LIKELIHOOD_BOUND)


def _ref_training(x, scales, u1, u2, delta, temperature, means):
    z = x / delta
    zf, zc = jnp.floor(z), jnp.ceil(z)
    eps = 1e-5
    i1 = jnp.clip(z - zf, -1.0 + eps, 1.0 - eps)
    a1 = 0.5 * jnp.log((1.0 + i1) / (1.0 - i1))
    i2 = jnp.clip(zc - z, -1.0 + eps, 1.0 - eps)
    a2 = 0.5 * jnp.log((1.0 + i2) / (1.0 - i2))
    logits = jnp.stack([-a1 / temperature, -a2 / temperature], -1)
    rx = jax.nn.softmax(logits, -1)
    u = jnp.clip(jnp.stack([u1, u2], -1), _EPS_PROB, 1.0 - _EPS_PROB)
    g = -jnp.log(-jnp.log(u))
    sample = jax.nn.softmax((jnp.log(rx) + g) / temperature, -1)
    out = (zf * sample[..., 0] + zc * sample[..., 1]) * delta
    return out, _ref_likelihood(out, scales, delta, means)


def _ref_inference(x, scales, delta, means):
    out = jnp.round((x - means) / delta) * delta + means
    return out, _ref_likelihood(out, scales, delta, means)


if __name__ == "__main__":
    key = jax.random.PRNGKey(0)
    kx, ks, km, ku1, ku2 = jax.random.split(key, 5)
    shape = (2, 4, 16, 16)  # NCHW, as in PyTorch
    inputs = jax.random.normal(kx, shape, jnp.float32) * 3.0
    scales = jax.random.uniform(ks, shape, jnp.float32, minval=0.05, maxval=2.0)
    means = jax.random.normal(km, shape, jnp.float32)
    u1 = jax.random.uniform(ku1, shape, jnp.float32)
    u2 = jax.random.uniform(ku2, shape, jnp.float32)

    # --- default forward: mode='training', means=None, external uniforms (checkable) ---
    out_tr, lik_tr, _ = gaussian_conditional_forward(
        inputs, scales, delta=1.0, means=None, mode='training',
        it=0, total_it=2000, uniforms=(u1, u2))
    jax.block_until_ready((out_tr, lik_tr))

    T = _annealed_temperature_np(0, 2000)
    ref_out_tr, ref_lik_tr = _ref_training(inputs, scales, u1, u2, 1.0, T, None)
    assert np.allclose(np.asarray(out_tr), np.asarray(ref_out_tr),
                       rtol=1e-3, atol=1e-4), "training outputs mismatch"
    assert np.allclose(np.asarray(lik_tr), np.asarray(ref_lik_tr),
                       rtol=1e-3, atol=1e-4), "training likelihood mismatch"

    # --- inference path: mode != 'training' with means ---
    out_inf, lik_inf, _ = gaussian_conditional_forward(
        inputs, scales, delta=1.0, means=means, mode='inference')
    jax.block_until_ready((out_inf, lik_inf))

    ref_out_inf, ref_lik_inf = _ref_inference(inputs, scales, 1.0, means)
    assert np.allclose(np.asarray(out_inf), np.asarray(ref_out_inf),
                       rtol=1e-3, atol=1e-4), "inference outputs mismatch"
    assert np.allclose(np.asarray(lik_inf), np.asarray(ref_lik_inf),
                       rtol=1e-3, atol=1e-4), "inference likelihood mismatch"

    # --- training with wrapper-generated uniforms (uniforms=None): sanity checks ---
    out_rng, lik_rng, _ = gaussian_conditional_forward(
        inputs, scales, delta=1.0, means=None, mode='training',
        it=100, total_it=2000, seed=1234)
    jax.block_until_ready((out_rng, lik_rng))

    o = np.asarray(out_rng)
    xf = np.floor(np.asarray(inputs))
    xc = np.ceil(np.asarray(inputs))
    assert np.all(np.isfinite(o)), "generated-uniforms outputs not finite"
    assert np.all(o >= xf - 1e-4) and np.all(o <= xc + 1e-4), \
        "generated-uniforms outputs outside [floor, ceil]"
    l = np.asarray(lik_rng)
    assert np.all(l >= LIKELIHOOD_BOUND - 1e-12) and np.all(l <= 1.0 + 1e-6), \
        "generated-uniforms likelihood out of range"

    # --- approximate (tanh-Phi) likelihood mode: outputs identical, likelihood close ---
    out_apx, lik_apx, _ = gaussian_conditional_forward(
        inputs, scales, delta=1.0, means=means, mode='inference',
        approx_likelihood=True)
    jax.block_until_ready((out_apx, lik_apx))
    assert np.allclose(np.asarray(out_apx), np.asarray(ref_out_inf),
                       rtol=1e-3, atol=1e-4), "approx-mode outputs mismatch"
    assert np.allclose(np.asarray(lik_apx), np.asarray(ref_lik_inf),
                       rtol=0.0, atol=2e-2), "approx-mode likelihood too far off"

    print("KERNEL_OK")
</pallas_src>

<mosaic_0001>
module attributes {stable_mosaic.version = 11 : i64} {
  func.func @_gc_kernel(%arg0: i32, %arg1: memref<2xf32, #tpu.memory_space<smem>>, %arg2: memref<1xi32, #tpu.memory_space<smem>>, %arg3: memref<16x128xf32, #tpu.memory_space<vmem>>, %arg4: memref<16x128xf32, #tpu.memory_space<vmem>>, %arg5: memref<16x128xf32, #tpu.memory_space<vmem>>, %arg6: memref<16x128xf32, #tpu.memory_space<vmem>>, %arg7: memref<16x128xf32, #tpu.memory_space<vmem>>, %arg8: memref<16x128xf32, #tpu.memory_space<vmem>>) attributes {dimension_semantics = [#tpu.dimension_semantics<parallel>], iteration_bounds = array<i64: 1>, scalar_prefetch = 2 : i64, scratch_operands = 0 : i64, tpu.core_type = #tpu.core_type<tc>, window_params = [{transform_indices = @transform_0, window_bounds = array<i64: 16, 128>}, {transform_indices = @transform_1, window_bounds = array<i64: 16, 128>}, {transform_indices = @transform_2, window_bounds = array<i64: 16, 128>}, {transform_indices = @transform_3, window_bounds = array<i64: 16, 128>}, {transform_indices = @transform_4, window_bounds = array<i64: 16, 128>}, {transform_indices = @transform_5, window_bounds = array<i64: 16, 128>}]} {
    %c0 = arith.constant 0 : index
    %0 = memref.load %arg1[%c0] : memref<2xf32, #tpu.memory_space<smem>>
    %cst = arith.constant 1.000000e+00 : f32
    %1 = arith.divf %cst, %0 : f32
    %c0_0 = arith.constant 0 : index
    %c0_1 = arith.constant 0 : index
    %2 = vector.load %arg3[%c0_0, %c0_1] : memref<16x128xf32, #tpu.memory_space<vmem>>, vector<16x128xf32>
    %c0_2 = arith.constant 0 : index
    %c0_3 = arith.constant 0 : index
    %3 = vector.load %arg4[%c0_2, %c0_3] : memref<16x128xf32, #tpu.memory_space<vmem>>, vector<16x128xf32>
    %c1 = arith.constant 1 : index
    %4 = memref.load %arg1[%c1] : memref<2xf32, #tpu.memory_space<smem>>
    %cst_4 = arith.constant 1.000000e+00 : f32
    %5 = arith.divf %cst_4, %4 : f32
    %6 = vector.broadcast %1 : f32 to vector<16x128xf32>
    %7 = arith.mulf %2, %6 : vector<16x128xf32>
    %8 = math.floor %7 : vector<16x128xf32>
    %9 = math.ceil %7 : vector<16x128xf32>
    %10 = arith.subf %7, %8 : vector<16x128xf32>
    %cst_5 = arith.constant -0.999989986 : f32
    %cst_6 = arith.constant 0.999989986 : f32
    %11 = vector.broadcast %cst_5 : f32 to vector<16x128xf32>
    %12 = arith.maximumf %11, %10 : vector<16x128xf32>
    %13 = vector.broadcast %cst_6 : f32 to vector<16x128xf32>
    %14 = arith.minimumf %13, %12 : vector<16x128xf32>
    %15 = arith.subf %9, %7 : vector<16x128xf32>
    %cst_7 = arith.constant -0.999989986 : f32
    %cst_8 = arith.constant 0.999989986 : f32
    %16 = vector.broadcast %cst_7 : f32 to vector<16x128xf32>
    %17 = arith.maximumf %16, %15 : vector<16x128xf32>
    %18 = vector.broadcast %cst_8 : f32 to vector<16x128xf32>
    %19 = arith.minimumf %18, %17 : vector<16x128xf32>
    %cst_9 = arith.constant 1.000000e+00 : f32
    %20 = vector.broadcast %cst_9 : f32 to vector<16x128xf32>
    %21 = arith.addf %20, %19 : vector<16x128xf32>
    %cst_10 = arith.constant 1.000000e+00 : f32
    %22 = vector.broadcast %cst_10 : f32 to vector<16x128xf32>
    %23 = arith.subf %22, %14 : vector<16x128xf32>
    %24 = arith.mulf %21, %23 : vector<16x128xf32>
    %25 = math.log %24 : vector<16x128xf32>
    %cst_11 = arith.constant 1.000000e+00 : f32
    %26 = vector.broadcast %cst_11 : f32 to vector<16x128xf32>
    %27 = arith.subf %26, %19 : vector<16x128xf32>
    %cst_12 = arith.constant 1.000000e+00 : f32
    %28 = vector.broadcast %cst_12 : f32 to vector<16x128xf32>
    %29 = arith.addf %28, %14 : vector<16x128xf32>
    %30 = arith.mulf %27, %29 : vector<16x128xf32>
    %31 = math.log %30 : vector<16x128xf32>
    %32 = arith.subf %25, %31 : vector<16x128xf32>
    %cst_13 = arith.constant 5.000000e-01 : f32
    %33 = vector.broadcast %cst_13 : f32 to vector<16x128xf32>
    %34 = arith.mulf %33, %32 : vector<16x128xf32>
    %c0_14 = arith.constant 0 : index
    %c0_15 = arith.constant 0 : index
    %35 = vector.load %arg5[%c0_14, %c0_15] : memref<16x128xf32, #tpu.memory_space<vmem>>, vector<16x128xf32>
    %cst_16 = arith.constant 1.1920929E-7 : f32
    %cst_17 = arith.constant 0.99999988 : f32
    %36 = vector.broadcast %cst_16 : f32 to vector<16x128xf32>
    %37 = arith.maximumf %36, %35 : vector<16x128xf32>
    %38 = vector.broadcast %cst_17 : f32 to vector<16x128xf32>
    %39 = arith.minimumf %38, %37 : vector<16x128xf32>
    %c0_18 = arith.constant 0 : index
    %c0_19 = arith.constant 0 : index
    %40 = vector.load %arg6[%c0_18, %c0_19] : memref<16x128xf32, #tpu.memory_space<vmem>>, vector<16x128xf32>
    %cst_20 = arith.constant 1.1920929E-7 : f32
    %cst_21 = arith.constant 0.99999988 : f32
    %41 = vector.broadcast %cst_20 : f32 to vector<16x128xf32>
    %42 = arith.maximumf %41, %40 : vector<16x128xf32>
    %43 = vector.broadcast %cst_21 : f32 to vector<16x128xf32>
    %44 = arith.minimumf %43, %42 : vector<16x128xf32>
    %45 = math.log %39 : vector<16x128xf32>
    %46 = math.log %44 : vector<16x128xf32>
    %cst_22 = arith.constant 0.000000e+00 : f32
    %47 = vector.broadcast %cst_22 : f32 to vector<16x128xf32>
    %48 = arith.subf %47, %46 : vector<16x128xf32>
    %49 = math.log %48 : vector<16x128xf32>
    %cst_23 = arith.constant 0.000000e+00 : f32
    %50 = vector.broadcast %cst_23 : f32 to vector<16x128xf32>
    %51 = arith.subf %50, %45 : vector<16x128xf32>
    %52 = math.log %51 : vector<16x128xf32>
    %53 = arith.subf %49, %52 : vector<16x128xf32>
    %54 = vector.broadcast %5 : f32 to vector<16x128xf32>
    %55 = arith.mulf %34, %54 : vector<16x128xf32>
    %56 = arith.addf %55, %53 : vector<16x128xf32>
    %57 = vector.broadcast %5 : f32 to vector<16x128xf32>
    %58 = arith.mulf %56, %57 : vector<16x128xf32>
    %cst_24 = arith.constant 5.000000e-01 : f32
    %59 = vector.broadcast %cst_24 : f32 to vector<16x128xf32>
    %60 = arith.mulf %59, %58 : vector<16x128xf32>
    %61 = math.tanh %60 : vector<16x128xf32>
    %cst_25 = arith.constant 5.000000e-01 : f32
    %62 = vector.broadcast %cst_25 : f32 to vector<16x128xf32>
    %63 = arith.mulf %62, %61 : vector<16x128xf32>
    %cst_26 = arith.constant 5.000000e-01 : f32
    %64 = vector.broadcast %cst_26 : f32 to vector<16x128xf32>
    %65 = arith.addf %64, %63 : vector<16x128xf32>
    %66 = arith.subf %9, %8 : vector<16x128xf32>
    %67 = arith.mulf %66, %65 : vector<16x128xf32>
    %68 = arith.subf %9, %67 : vector<16x128xf32>
    %69 = vector.broadcast %0 : f32 to vector<16x128xf32>
    %70 = arith.mulf %68, %69 : vector<16x128xf32>
    %c0_27 = arith.constant 0 : index
    %c0_28 = arith.constant 0 : index
    %71 = vector.load %arg7[%c0_27, %c0_28] : memref<16x128xf32, #tpu.memory_space<vmem>>, vector<16x128xf32>
    tpu.vector_store %arg7[%c0_27, %c0_28], %70 {strides = array<i32>} : memref<16x128xf32, #tpu.memory_space<vmem>>, vector<16x128xf32>,
    %cst_29 = arith.constant 1.100000e-01 : f32
    %72 = vector.broadcast %cst_29 : f32 to vector<16x128xf32>
    %73 = arith.maximumf %3, %72 : vector<16x128xf32>
    %74 = math.absf %70 : vector<16x128xf32>
    %cst_30 = arith.constant 5.000000e-01 : f32
    %75 = arith.mulf %cst_30, %0 : f32
    %cst_31 = arith.constant 0.707106769 : f32
    %76 = vector.broadcast %cst_31 : f32 to vector<16x128xf32>
    %77 = arith.divf %76, %73 : vector<16x128xf32>
    %78 = vector.broadcast %75 : f32 to vector<16x128xf32>
    %79 = arith.addf %74, %78 : vector<16x128xf32>
    %80 = arith.mulf %79, %77 : vector<16x128xf32>
    %81 = math.erf %80 : vector<16x128xf32>
    %82 = vector.broadcast %75 : f32 to vector<16x128xf32>
    %83 = arith.subf %74, %82 : vector<16x128xf32>
    %84 = arith.mulf %83, %77 : vector<16x128xf32>
    %85 = math.erf %84 : vector<16x128xf32>
    %86 = arith.subf %81, %85 : vector<16x128xf32>
    %cst_32 = arith.constant 5.000000e-01 : f32
    %87 = vector.broadcast %cst_32 : f32 to vector<16x128xf32>
    %88 = arith.mulf %87, %86 : vector<16x128xf32>
    %cst_33 = arith.constant 9.99999971E-10 : f32
    %89 = vector.broadcast %cst_33 : f32 to vector<16x128xf32>
    %90 = arith.maximumf %88, %89 : vector<16x128xf32>
    %c0_34 = arith.constant 0 : index
    %c0_35 = arith.constant 0 : index
    %91 = vector.load %arg8[%c0_34, %c0_35] : memref<16x128xf32, #tpu.memory_space<vmem>>, vector<16x128xf32>
    tpu.vector_store %arg8[%c0_34, %c0_35], %90 {strides = array<i32>} : memref<16x128xf32, #tpu.memory_space<vmem>>, vector<16x128xf32>,
    return
  }
  func.func @transform_0(%arg0: i32, %arg1: memref<2xf32, #tpu.memory_space<smem>>, %arg2: memref<1xi32, #tpu.memory_space<smem>>) -> (i32, i32) {
    %c0_i32 = arith.constant 0 : i32
    %c0_i32_0 = arith.constant 0 : i32
    return %arg0, %c0_i32 : i32, i32
  }
  func.func @transform_1(%arg0: i32, %arg1: memref<2xf32, #tpu.memory_space<smem>>, %arg2: memref<1xi32, #tpu.memory_space<smem>>) -> (i32, i32) {
    %c0_i32 = arith.constant 0 : i32
    %c0_i32_0 = arith.constant 0 : i32
    return %arg0, %c0_i32 : i32, i32
  }
  func.func @transform_2(%arg0: i32, %arg1: memref<2xf32, #tpu.memory_space<smem>>, %arg2: memref<1xi32, #tpu.memory_space<smem>>) -> (i32, i32) {
    %c0_i32 = arith.constant 0 : i32
    %c0_i32_0 = arith.constant 0 : i32
    return %arg0, %c0_i32 : i32, i32
  }
  func.func @transform_3(%arg0: i32, %arg1: memref<2xf32, #tpu.memory_space<smem>>, %arg2: memref<1xi32, #tpu.memory_space<smem>>) -> (i32, i32) {
    %c0_i32 = arith.constant 0 : i32
    %c0_i32_0 = arith.constant 0 : i32
    return %arg0, %c0_i32 : i32, i32
  }
  func.func @transform_4(%arg0: i32, %arg1: memref<2xf32, #tpu.memory_space<smem>>, %arg2: memref<1xi32, #tpu.memory_space<smem>>) -> (i32, i32) {
    %c0_i32 = arith.constant 0 : i32
    %c0_i32_0 = arith.constant 0 : i32
    return %arg0, %c0_i32 : i32, i32
  }
  func.func @transform_5(%arg0: i32, %arg1: memref<2xf32, #tpu.memory_space<smem>>, %arg2: memref<1xi32, #tpu.memory_space<smem>>) -> (i32, i32) {
    %c0_i32 = arith.constant 0 : i32
    %c0_i32_0 = arith.constant 0 : i32
    return %arg0, %c0_i32 : i32, i32
  }
}

</mosaic_0001>

<bundles_post_ra>
// kernel: gaussian_conditional_forward.1
= control target key start
LH: loop header
LB: loop body
LE: loop exit
PB: predicated region body
PF: predicated region fallthrough
CT: control target
= control target key end

     0   :  { %s463_s26 = smov [#allocation3]   ;;  %s707_s0 = inlined_call_operand.vmem [shape: f32[2], index: 0, kind: input, shape index: {}]   ;;  %s708_s1 = inlined_call_operand.<no memory space> [shape: s32[1], index: 1, kind: input, shape index: {}]   ;;  %s709_s2 = inlined_call_operand.vmem [shape: f32[16,128], index: 2, kind: input, shape index: {}]   ;;  %s710_s3 = inlined_call_operand.vmem [shape: f32[16,128], index: 3, kind: input, shape index: {}]   ;;  %s711_s4 = inlined_call_operand.vmem [shape: f32[16,128], index: 4, kind: input, shape index: {}]   ;;  %s712_s5 = inlined_call_operand.vmem [shape: f32[16,128], index: 5, kind: input, shape index: {}]   ;;  %s713_s6 = inlined_call_operand.vmem [shape: f32[16,128], index: 6, kind: output, shape index: {0}]   ;;  %s714_s7 = inlined_call_operand.vmem [shape: f32[16,128], index: 7, kind: output, shape index: {1}]  }
   0x1   :  { %s14_s25 = sshll.u32 %s707_s0, 4  ;;  %s15_s25 = int_to_ptr.vmem [resolvable:$true] %s14_s25 }
   0x2   :  { %17 = dma.vmem_to_smem %s15_s25, 16, %s463_s26, [#allocation2] }
   0x3   :  { %461 = dma.done.wait [#allocation2], 16 }
   0x4   :  { %462 = vsyncadd [#allocation2], 4294967280 }
   0x5   :  { %21 = sfence }
   0x6   :  { %s507_s27 = sld [smem:[#allocation3]]  ;;  %v111_v22 = vld [vmem:[%s711_s4] sm:$0xff]  ;;  %v112_v23 = vld [vmem:[%s711_s4 + $0x8] sm:$0xff] }
   0x7   :  { %s391_s28 = sld [smem:[#allocation3 + $0x1]]  ;;  %v113_v24 = vmax.f32 %v111_v22, 1.1920929e-07  ;;  %v117_v25 = vld [vmem:[%s712_s5] sm:$0xff]  ;;  %v114_v26 = vmax.f32 %v112_v23, 1.1920929e-07  ;;  %v118_v27 = vld [vmem:[%s712_s5 + $0x8] sm:$0xff] }
   0x8   :  { %v119_v29 = vmax.f32 %v117_v25, 1.1920929e-07  ;;  %v120_v31 = vmax.f32 %v118_v27, 1.1920929e-07  ;;  %v47_v36 = vld [vmem:[%s709_s2] sm:$0xff]  ;;  %v48_v37 = vld [vmem:[%s709_s2 + $0x8] sm:$0xff] }
   0x9   :  { %v115_v28 = vmin.f32 %v113_v24, 0.9999999  ;;  %v116_v30 = vmin.f32 %v114_v26, 0.9999999 }
   0xa   :  { %v121_v32 = vmin.f32 %v119_v29, 0.9999999  ;;  %v122_v33 = vmin.f32 %v120_v31, 0.9999999 }
   0xc   :  { %v510_v0 = vstv %s507_s27 }
   0xd   :  { %405 = vrcp.f32 %v510_v0  ;;  %v52_v1 = vstv %s391_s28  ;;  %vm37_vm0 = vweird.f32 %v510_v0  ;;  %v43_v5 = vand.u32 2147483648, %v510_v0 }
   0xe   :  { %407 = vrcp.f32 %v52_v1  ;;  %v41_v7 = vand.u32 2147483647, %v510_v0  ;;  %vm58_vm2 = vweird.f32 %v52_v1  ;;  %v64_v9 = vand.u32 2147483648, %v52_v1 }
   0xf   :  { %v62_v12 = vand.u32 2147483647, %v52_v1  ;;  %v44_v13 = vor.u32 1.1754944e-38, %v43_v5  ;;  %409 = vlog2.f32 %v115_v28 }
  0x10   :  { %vm42_vm5 = vcmp.eq.f32.partialorder %v41_v7, 8.507059e+37  ;;  %v65_v16 = vor.u32 1.1754944e-38, %v64_v9  ;;  %411 = vlog2.f32 %v116_v30 }
  0x11   :  { %vm63_vm7 = vcmp.eq.f32.partialorder %v62_v12, 8.507059e+37  ;;  %413 = vlog2.f32 %v121_v32 }
  0x12   :  { %415 = vlog2.f32 %v122_v33 }
  0x13   :  { %v406_v2 = vpop.eup %405 }
  0x14   :  { %v33_v3 = vmul.f32 %v406_v2, %v510_v0  ;;  %v408_v4 = vpop.eup %407  ;;  %vm38_vm1 = vweird.f32 %v406_v2 }
  0x15   :  { %v54_v8 = vmul.f32 %v408_v4, %v52_v1  ;;  %vm59_vm3 = vweird.f32 %v408_v4  ;;  %vm39_vm4 = vmor %vm37_vm0, %vm38_vm1  ;;  %v410_v34 = vpop.eup %409 }
  0x16   :  { %v34_v6 = vsub.f32 1.0, %v33_v3  ;;  %vm60_vm6 = vmor %vm58_vm2, %vm59_vm3  ;;  %v412_v35 = vpop.eup %411  ;;  %v124_v38 = vmul.f32 0.6931472, %v410_v34 }
  0x17   :  { %v55_v11 = vsub.f32 1.0, %v54_v8  ;;  %v414_v39 = vpop.eup %413  ;;  %v126_v41 = vmul.f32 0.6931472, %v412_v35 }
  0x18   :  { %v35_v10 = vmul.f32 %v406_v2, %v34_v6  ;;  %v416_v42 = vpop.eup %415  ;;  %v128_v45 = vmul.f32 0.6931472, %v414_v39  ;;  %v137_v46 = vsub.f32 0.0, %v124_v38 }
  0x19   :  { %v56_v15 = vmul.f32 %v408_v4, %v55_v11  ;;  %v130_v51 = vmul.f32 0.6931472, %v416_v42  ;;  %v138_v52 = vsub.f32 0.0, %v126_v41 }
  0x1a   :  { %v36_v14 = vadd.f32 %v406_v2, %v35_v10  ;;  %v131_v57 = vsub.f32 0.0, %v128_v45  ;;  %417 = vlog2.f32 %v137_v46 }
  0x1b   :  { %v57_v18 = vadd.f32 %v408_v4, %v56_v15  ;;  %v132_v62 = vsub.f32 0.0, %v130_v51  ;;  %419 = vlog2.f32 %v138_v52  ;;  %v50_v15 = vld [vmem:[%s710_s3 + $0x8] sm:$0xff] }
  0x1c   :  { %v40_v17 = vsel %vm39_vm4, %v406_v2, %v36_v14  ;;  %421 = vlog2.f32 %v131_v57  ;;  %v49_v14 = vld [vmem:[%s710_s3] sm:$0xff]  ;;  %s175_s3 = smul.f32 0.5, %s507_s27 }
  0x1d   :  { %v45_v19 = vsel %vm42_vm5, %v44_v13, %v40_v17  ;;  %v61_v20 = vsel %vm60_vm6, %v408_v4, %v57_v18  ;;  %423 = vlog2.f32 %v132_v62  ;;  %v563_v18 = vmax.f32 %v49_v14, 0.11 }
  0x1e   :  { %400 = vpush %v45_v19  ;;  %v66_v21 = vsel %vm63_vm7, %v65_v16, %v61_v20  ;;  %v565_v20 = vmax.f32 %v50_v15, 0.11 }
  0x1f   :  { %402 = vpush %v66_v21  ;;  %vm181_vm8 = vweird.f32 %v563_v18  ;;  %v187_v62 = vand.u32 2147483648, %v563_v18 }
  0x20   :  { %v418_v12 = vpop.eup %417  ;;  %vm196_vm10 = vweird.f32 %v565_v20 }
  0x21   :  { %v420_v13 = vpop.eup %419  ;;  %v140_v28 = vmul.f32 0.6931472, %v418_v12  ;;  %v188_v14 = vor.u32 1.1754944e-38, %v187_v62 }
  0x22   :  { %v422_v16 = vpop.eup %421  ;;  %v142_v31 = vmul.f32 0.6931472, %v420_v13 }
  0x23   :  { %v424_v17 = vpop.eup %423  ;;  %v134_v27 = vmul.f32 0.6931472, %v422_v16 }
  0x24   :  { %v136_v30 = vmul.f32 0.6931472, %v424_v17 }
  0x26   :  { %v144_v38 = vsub.f32 %v136_v30, %v142_v31 }
  0x4f   :  { %s401_s5 = spop %400 }
  0x50   :  { %v68_v40 = vstv %s401_s5  ;;  %s403_s19 = spop %402 }
  0x51   :  { %v535_v43 = vmul.f32 %v68_v40, %v47_v36  ;;  %v537_v44 = vmul.f32 %v68_v40, %v48_v37  ;;  %v145_v34 = vstv %s403_s19  ;;  %v143_v36 = vsub.f32 %v134_v27, %v140_v28 }
  0x53   :  { %v71_v47 = vfloor.f32 %v535_v43  ;;  %v72_v48 = vfloor.f32 %v537_v44  ;;  %v542_v49 = vceil.f32 %v535_v43  ;;  %v545_v50 = vceil.f32 %v537_v44 }
  0x55   :  { %v75_v53 = vsub.f32 %v535_v43, %v71_v47  ;;  %v76_v54 = vsub.f32 %v537_v44, %v72_v48  ;;  %v81_v55 = vsub.f32 %v542_v49, %v535_v43  ;;  %v82_v56 = vsub.f32 %v545_v50, %v537_v44 }
  0x56   :  { %v161_v13 = vsub.f32 %v545_v50, %v72_v48 }
  0x57   :  { %v392_v58 = vclamps-f32 %v75_v53, 0.99999  ;;  %v393_v59 = vclamps-f32 %v76_v54, 0.99999  ;;  %v394_v60 = vclamps-f32 %v81_v55, 0.99999 }
  0x58   :  { %v395_v61 = vclamps-f32 %v82_v56, 0.99999 }
  0x59   :  { %v87_v63 = vadd.f32 1.0, %v394_v60  ;;  %v89_v1 = vsub.f32 1.0, %v392_v58  ;;  %v90_v2 = vsub.f32 1.0, %v393_v59  ;;  %v97_v3 = vsub.f32 1.0, %v394_v60 }
  0x5a   :  { %v88_v4 = vadd.f32 1.0, %v395_v61  ;;  %v98_v5 = vsub.f32 1.0, %v395_v61  ;;  %v99_v6 = vadd.f32 1.0, %v392_v58  ;;  %v100_v7 = vadd.f32 1.0, %v393_v59 }
  0x5b   :  { %v91_v8 = vmul.f32 %v89_v1, %v87_v63 }
  0x5c   :  { %v92_v9 = vmul.f32 %v90_v2, %v88_v4  ;;  %v101_v10 = vmul.f32 %v99_v6, %v97_v3  ;;  %v102_v11 = vmul.f32 %v100_v7, %v98_v5  ;;  %v185_v3 = vand.u32 2147483647, %v563_v18 }
  0x5d   :  { %425 = vlog2.f32 %v91_v8  ;;  %v202_v4 = vand.u32 2147483648, %v565_v20  ;;  %v200_v8 = vand.u32 2147483647, %v565_v20 }
  0x5e   :  { %427 = vlog2.f32 %v92_v9  ;;  %vm186_vm14 = vcmp.eq.f32.partialorder %v185_v3, 8.507059e+37 }
  0x5f   :  { %429 = vlog2.f32 %v101_v10  ;;  %v160_v10 = vsub.f32 %v542_v49, %v71_v47  ;;  %v203_v17 = vor.u32 1.1754944e-38, %v202_v4  ;;  %vm201_vm15 = vcmp.eq.f32.partialorder %v200_v8, 8.507059e+37 }
  0x60   :  { %431 = vlog2.f32 %v102_v11 }
  0x61   :  { %433 = vrcp.f32 %v563_v18 }
  0x62   :  { %435 = vrcp.f32 %v565_v20 }
  0x63   :  { %v426_v19 = vpop.eup %425 }
  0x64   :  { %v428_v21 = vpop.eup %427  ;;  %v94_v22 = vmul.f32 0.6931472, %v426_v19 }
  0x65   :  { %v430_v23 = vpop.eup %429  ;;  %v96_v24 = vmul.f32 0.6931472, %v428_v21 }
  0x66   :  { %v432_v25 = vpop.eup %431  ;;  %v104_v26 = vmul.f32 0.6931472, %v430_v23 }
  0x67   :  { %v106_v29 = vmul.f32 0.6931472, %v432_v25  ;;  %v434_v39 = vpop.eup %433 }
  0x68   :  { %v107_v32 = vsub.f32 %v94_v22, %v104_v26  ;;  %v436_v41 = vpop.eup %435  ;;  %v177_v51 = vmul.f32 %v434_v39, %v563_v18  ;;  %vm182_vm9 = vweird.f32 %v434_v39  ;;  %v206_v22 = vstv %s175_s3 }
  0x69   :  { %v108_v33 = vsub.f32 %v96_v24, %v106_v29  ;;  %v192_v53 = vmul.f32 %v436_v41, %v565_v20  ;;  %vm197_vm11 = vweird.f32 %v436_v41  ;;  %vm576_vm12 = vmor %vm181_vm8, %vm182_vm9 }
  0x6a   :  { %v109_v35 = vmul.f32 0.5, %v107_v32  ;;  %v178_v57 = vsub.f32 1.0, %v177_v51  ;;  %vm584_vm13 = vmor %vm196_vm10, %vm197_vm11 }
  0x6b   :  { %v110_v37 = vmul.f32 0.5, %v108_v33  ;;  %v193_v58 = vsub.f32 1.0, %v192_v53 }
  0x6c   :  { %v146_v40 = vmul.f32 %v145_v34, %v109_v35  ;;  %v179_v59 = vmul.f32 %v434_v39, %v178_v57 }
  0x6d   :  { %v147_v42 = vmul.f32 %v145_v34, %v110_v37  ;;  %v194_v60 = vmul.f32 %v436_v41, %v193_v58 }
  0x6e   :  { %v148_v45 = vadd.f32 %v146_v40, %v143_v36  ;;  %v180_v2 = vadd.f32 %v434_v39, %v179_v59 }
  0x6f   :  { %v149_v46 = vadd.f32 %v147_v42, %v144_v38  ;;  %v195_v7 = vadd.f32 %v436_v41, %v194_v60 }
  0x70   :  { %v150_v52 = vmul.f32 %v148_v45, %v145_v34  ;;  %v184_v16 = vsel %vm576_vm12, %v434_v39, %v180_v2 }
  0x71   :  { %v151_v54 = vmul.f32 %v149_v46, %v145_v34  ;;  %v199_v43 = vsel %vm584_vm13, %v436_v41, %v195_v7  ;;  %v189_v44 = vsel %vm186_vm14, %v188_v14, %v184_v16 }
  0x72   :  { %v152_v55 = vmul.f32 0.5, %v150_v52  ;;  %v204_v20 = vsel %vm201_vm15, %v203_v17, %v199_v43  ;;  %v190_v24 = vmul.f32 0.70710677, %v189_v44 }
  0x73   :  { %v153_v56 = vmul.f32 0.5, %v151_v54  ;;  %v205_v25 = vmul.f32 0.70710677, %v204_v20 }
  0x74   :  { %437 = vtanh.f32 %v152_v55 }
  0x75   :  { %439 = vtanh.f32 %v153_v56 }
  0x7a   :  { %v438_v61 = vpop.eup %437 }
  0x7b   :  { %v440_v63 = vpop.eup %439  ;;  %v156_v1 = vmul.f32 0.5, %v438_v61 }
  0x7c   :  { %v157_v5 = vmul.f32 0.5, %v440_v63 }
  0x7d   :  { %v158_v9 = vadd.f32 0.5, %v156_v1 }
  0x7e   :  { %v159_v12 = vadd.f32 0.5, %v157_v5 }
  0x7f   :  { %v162_v15 = vmul.f32 %v160_v10, %v158_v9 }
  0x80   :  { %v163_v18 = vmul.f32 %v161_v13, %v159_v12 }
  0x81   :  { %v164_v47 = vsub.f32 %v542_v49, %v162_v15 }
  0x82   :  { %v165_v19 = vsub.f32 %v545_v50, %v163_v18 }
  0x83   :  { %v167_v48 = vmul.f32 %v164_v47, %v510_v0 }
  0x84   :  { %v168_v21 = vmul.f32 %v165_v19, %v510_v0 }
  0x85   :  { %169 = vst [vmem:[%s713_s6] sm:$0xff] %v167_v48  ;;  %v173_v23 = vand.u32 2147483647, %v167_v48 }
  0x86   :  { %170 = vst [vmem:[%s713_s6 + $0x8] sm:$0xff] %v168_v21  ;;  %v174_v49 = vand.u32 2147483647, %v168_v21 }
  0x87   :  { %v207_v50 = vadd.f32 %v206_v22, %v173_v23  ;;  %v291_v26 = vsub.f32 %v173_v23, %v206_v22 }
  0x88   :  { %v208_v27 = vadd.f32 %v206_v22, %v174_v49  ;;  %v292_v28 = vsub.f32 %v174_v49, %v206_v22 }
  0x89   :  { %v606_v29 = vmul.f32 %v207_v50, %v190_v24  ;;  %v608_v0 = vmul.f32 %v291_v26, %v190_v24 }
  0x8a   :  { %v610_v30 = vmul.f32 %v208_v27, %v205_v25  ;;  %v612_v31 = vmul.f32 %v292_v28, %v205_v25 }
  0x8b   :  { %v211_v32 = vmul.f32 %v606_v29, %v606_v29  ;;  %v295_v33 = vmul.f32 %v608_v0, %v608_v0 }
  0x8c   :  { %v251_v34 = vmul.f32 %v610_v30, %v610_v30  ;;  %v335_v35 = vmul.f32 %v612_v31, %v612_v31 }
  0x8d   :  { %v622_v36 = vmin.f32 %v211_v32, 16.0  ;;  %v624_v37 = vmin.f32 %v295_v33, 16.0 }
  0x8e   :  { %v626_v38 = vmin.f32 %v251_v34, 16.0  ;;  %v628_v39 = vmin.f32 %v335_v35, 16.0 }
  0x8f   :  { %v213_v40 = vmul.f32 2.1237322e-06, %v622_v36  ;;  %v224_v41 = vmul.f32 3.8918573e-05, %v622_v36  ;;  %v297_v42 = vmul.f32 2.1237322e-06, %v624_v37 }
  0x90   :  { %v253_v45 = vmul.f32 2.1237322e-06, %v626_v38  ;;  %v264_v46 = vmul.f32 3.8918573e-05, %v626_v38  ;;  %v308_v51 = vmul.f32 3.8918573e-05, %v624_v37 }
  0x91   :  { %v214_v52 = vadd.f32 0.00028619796, %v213_v40  ;;  %v225_v53 = vadd.f32 0.001143296, %v224_v41  ;;  %v298_v54 = vadd.f32 0.00028619796, %v297_v42 }
  0x92   :  { %v254_v55 = vadd.f32 0.00028619796, %v253_v45  ;;  %v265_v56 = vadd.f32 0.001143296, %v264_v46  ;;  %v309_v57 = vadd.f32 0.001143296, %v308_v51 }
  0x93   :  { %v215_v58 = vmul.f32 %v214_v52, %v622_v36  ;;  %v226_v59 = vmul.f32 %v225_v53, %v622_v36  ;;  %v299_v60 = vmul.f32 %v298_v54, %v624_v37  ;;  %v337_v61 = vmul.f32 2.1237322e-06, %v628_v39 }
  0x94   :  { %v255_v62 = vmul.f32 %v254_v55, %v626_v38  ;;  %v266_v63 = vmul.f32 %v265_v56, %v626_v38  ;;  %v310_v1 = vmul.f32 %v309_v57, %v624_v37  ;;  %v348_v2 = vmul.f32 3.8918573e-05, %v628_v39 }
  0x95   :  { %v216_v3 = vadd.f32 0.0036580483, %v215_v58  ;;  %v227_v4 = vadd.f32 0.014752088, %v226_v59  ;;  %v300_v5 = vadd.f32 0.0036580483, %v299_v60 }
  0x96   :  { %v256_v6 = vadd.f32 0.0036580483, %v255_v62  ;;  %v267_v7 = vadd.f32 0.014752088, %v266_v63  ;;  %v311_v8 = vadd.f32 0.014752088, %v310_v1 }
  0x97   :  { %v217_v9 = vmul.f32 %v216_v3, %v622_v36  ;;  %v228_v10 = vmul.f32 %v227_v4, %v622_v36  ;;  %v301_v11 = vmul.f32 %v300_v5, %v624_v37  ;;  %v338_v14 = vadd.f32 0.00028619796, %v337_v61 }
  0x98   :  { %v268_v12 = vmul.f32 %v267_v7, %v626_v38  ;;  %v312_v13 = vmul.f32 %v311_v8, %v624_v37  ;;  %v349_v15 = vadd.f32 0.001143296, %v348_v2  ;;  %v257_v18 = vmul.f32 %v256_v6, %v626_v38 }
  0x99   :  { %v218_v16 = vadd.f32 0.05243302, %v217_v9  ;;  %v229_v17 = vadd.f32 0.112945676, %v228_v10  ;;  %v302_v48 = vadd.f32 0.05243302, %v301_v11  ;;  %v339_v22 = vmul.f32 %v338_v14, %v628_v39 }
  0x9a   :  { %v269_v43 = vadd.f32 0.112945676, %v268_v12  ;;  %v313_v47 = vadd.f32 0.112945676, %v312_v13  ;;  %v350_v19 = vmul.f32 %v349_v15, %v628_v39  ;;  %v258_v25 = vadd.f32 0.05243302, %v257_v18 }
  0x9b   :  { %v230_v44 = vmul.f32 %v229_v17, %v622_v36  ;;  %v219_v24 = vmul.f32 %v218_v16, %v622_v36  ;;  %v303_v32 = vmul.f32 %v302_v48, %v624_v37  ;;  %v340_v35 = vadd.f32 0.0036580483, %v339_v22 }
  0x9c   :  { %v270_v20 = vmul.f32 %v269_v43, %v626_v38  ;;  %v314_v21 = vmul.f32 %v313_v47, %v624_v37  ;;  %v351_v23 = vadd.f32 0.014752088, %v350_v19  ;;  %v259_v45 = vmul.f32 %v258_v25, %v626_v38 }
  0x9d   :  { %v231_v49 = vadd.f32 0.4994258, %v230_v44  ;;  %v220_v41 = vadd.f32 0.18741608, %v219_v24  ;;  %v304_v52 = vadd.f32 0.18741608, %v303_v32  ;;  %v341_v53 = vmul.f32 %v340_v35, %v628_v39 }
  0x9e   :  { %v271_v50 = vadd.f32 0.4994258, %v270_v20  ;;  %v315_v26 = vadd.f32 0.4994258, %v314_v21  ;;  %v352_v27 = vmul.f32 %v351_v23, %v628_v39  ;;  %v260_v56 = vadd.f32 0.18741608, %v259_v45 }
  0x9f   :  { %v232_v28 = vmul.f32 %v231_v49, %v622_v36  ;;  %v221_v55 = vmul.f32 %v220_v41, %v622_v36  ;;  %v305_v57 = vmul.f32 %v304_v52, %v624_v37  ;;  %v342_v58 = vadd.f32 0.05243302, %v341_v53 }
  0xa0   :  { %v272_v33 = vmul.f32 %v271_v50, %v626_v38  ;;  %v316_v34 = vmul.f32 %v315_v26, %v624_v37  ;;  %v353_v40 = vadd.f32 0.112945676, %v352_v27  ;;  %v261_v62 = vmul.f32 %v260_v56, %v626_v38 }
  0xa1   :  { %v233_v42 = vadd.f32 1.0, %v232_v28  ;;  %v222_v61 = vadd.f32 1.1283791, %v221_v55  ;;  %v306_v6 = vadd.f32 1.1283791, %v305_v57  ;;  %v343_v7 = vmul.f32 %v342_v58, %v628_v39 }
  0xa2   :  { %v662_v46 = vadd.f32 1.0, %v272_v33  ;;  %v664_v51 = vadd.f32 1.0, %v316_v34  ;;  %v354_v54 = vmul.f32 %v353_v40, %v628_v39  ;;  %v262_v9 = vadd.f32 1.1283791, %v261_v62 }
  0xa3   :  { %441 = vrcp.f32 %v233_v42  ;;  %v245_v3 = vand.u32 2147483648, %v233_v42  ;;  %v223_v37 = vmul.f32 %v222_v61, %v606_v29  ;;  %v243_v12 = vand.u32 2147483647, %v233_v42 }
  0xa4   :  { %443 = vrcp.f32 %v662_v46  ;;  %v355_v59 = vadd.f32 0.4994258, %v354_v54  ;;  %vm239_vm1 = vweird.f32 %v233_v42  ;;  %v329_v17 = vand.u32 2147483648, %v664_v51 }
  0xa5   :  { %445 = vrcp.f32 %v664_v51  ;;  %v246_v13 = vor.u32 1.1754944e-38, %v245_v3  ;;  %v344_v18 = vadd.f32 0.18741608, %v343_v7  ;;  %v327_v47 = vand.u32 2147483647, %v664_v51 }
  0xa6   :  { %v356_v2 = vmul.f32 %v355_v59, %v628_v39  ;;  %vm244_vm5 = vcmp.eq.f32.partialorder %v243_v12, 8.507059e+37  ;;  %vm279_vm6 = vweird.f32 %v662_v46  ;;  %v285_v44 = vand.u32 2147483648, %v662_v46 }
  0xa7   :  { %v283_v21 = vand.u32 2147483647, %v662_v46  ;;  %vm323_vm8 = vweird.f32 %v664_v51  ;;  %v307_v49 = vmul.f32 %v306_v6, %v608_v0  ;;  %v330_v25 = vor.u32 1.1754944e-38, %v329_v17 }
  0xa8   :  { %v676_v8 = vadd.f32 1.0, %v356_v2  ;;  %v345_v50 = vmul.f32 %v344_v18, %v628_v39  ;;  %vm328_vm10 = vcmp.eq.f32.partialorder %v327_v47, 8.507059e+37  ;;  %v286_v32 = vor.u32 1.1754944e-38, %v285_v44 }
  0xa9   :  { %v442_v60 = vpop.eup %441  ;;  %vm284_vm11 = vcmp.eq.f32.partialorder %v283_v21, 8.507059e+37  ;;  %v263_v41 = vmul.f32 %v262_v9, %v610_v30 }
  0xaa   :  { %v444_v63 = vpop.eup %443  ;;  %v235_v1 = vmul.f32 %v442_v60, %v233_v42  ;;  %vm240_vm0 = vweird.f32 %v442_v60  ;;  %447 = vrcp.f32 %v676_v8  ;;  %v346_v42 = vadd.f32 1.1283791, %v345_v50 }
  0xab   :  { %v275_v4 = vmul.f32 %v444_v63, %v662_v46  ;;  %v446_v5 = vpop.eup %445  ;;  %vm280_vm2 = vweird.f32 %v444_v63  ;;  %vm241_vm3 = vmor %vm239_vm1, %vm240_vm0  ;;  %v369_v45 = vand.u32 2147483648, %v676_v8  ;;  %vm363_vm13 = vweird.f32 %v676_v8 }
  0xac   :  { %v236_v36 = vsub.f32 1.0, %v235_v1  ;;  %v319_v38 = vmul.f32 %v446_v5, %v664_v51  ;;  %vm324_vm4 = vweird.f32 %v446_v5  ;;  %vm685_vm7 = vmor %vm279_vm6, %vm280_vm2  ;;  %v367_v51 = vand.u32 2147483647, %v676_v8 }
  0xad   :  { %v276_v10 = vsub.f32 1.0, %v275_v4  ;;  %vm325_vm9 = vmor %vm323_vm8, %vm324_vm4  ;;  %v370_v55 = vor.u32 1.1754944e-38, %v369_v45  ;;  %v347_v56 = vmul.f32 %v346_v42, %v612_v31 }
  0xae   :  { %v237_v11 = vmul.f32 %v442_v60, %v236_v36  ;;  %v320_v15 = vsub.f32 1.0, %v319_v38  ;;  %vm368_vm15 = vcmp.eq.f32.partialorder %v367_v51, 8.507059e+37 }
  0xaf   :  { %v277_v14 = vmul.f32 %v444_v63, %v276_v10 }
  0xb0   :  { %v238_v16 = vadd.f32 %v442_v60, %v237_v11  ;;  %v321_v43 = vmul.f32 %v446_v5, %v320_v15  ;;  %v448_v23 = vpop.eup %447 }
  0xb1   :  { %v278_v29 = vadd.f32 %v444_v63, %v277_v14  ;;  %v359_v28 = vmul.f32 %v448_v23, %v676_v8  ;;  %vm364_vm12 = vweird.f32 %v448_v23 }
  0xb2   :  { %v242_v19 = vsel %vm241_vm3, %v442_v60, %v238_v16  ;;  %v322_v22 = vadd.f32 %v446_v5, %v321_v43  ;;  %vm365_vm14 = vmor %vm363_vm13, %vm364_vm12 }
  0xb3   :  { %v247_v48 = vsel %vm244_vm5, %v246_v13, %v242_v19  ;;  %v282_v26 = vsel %vm685_vm7, %v444_v63, %v278_v29  ;;  %v360_v40 = vsub.f32 1.0, %v359_v28 }
  0xb4   :  { %v248_v24 = vmul.f32 %v247_v48, %v223_v37  ;;  %v326_v27 = vsel %vm325_vm9, %v446_v5, %v322_v22  ;;  %v287_v0 = vsel %vm284_vm11, %v286_v32, %v282_v26 }
  0xb5   :  { %v331_v33 = vsel %vm328_vm10, %v330_v25, %v326_v27  ;;  %v361_v46 = vmul.f32 %v448_v23, %v360_v40  ;;  %v288_v52 = vmul.f32 %v287_v0, %v263_v41 }
  0xb6   :  { %v396_v34 = vclamps-f32 %v248_v24, 1.0  ;;  %v332_v35 = vmul.f32 %v331_v33, %v307_v49 }
  0xb7   :  { %v362_v53 = vadd.f32 %v448_v23, %v361_v46  ;;  %v397_v59 = vclamps-f32 %v288_v52, 1.0 }
  0xb8   :  { %v398_v39 = vclamps-f32 %v332_v35, 1.0 }
  0xb9   :  { %v366_v57 = vsel %vm365_vm14, %v448_v23, %v362_v53 }
  0xba   :  { %v375_v54 = vsub.f32 %v396_v34, %v398_v39  ;;  %v371_v58 = vsel %vm368_vm15, %v370_v55, %v366_v57 }
  0xbb   :  { %v372_v60 = vmul.f32 %v371_v58, %v347_v56 }
  0xbc   :  { %v377_v30 = vmul.f32 0.5, %v375_v54 }
  0xbd   :  { %v399_v62 = vclamps-f32 %v372_v60, 1.0 }
  0xbe   :  { %v379_v61 = vmax.f32 %v377_v30, 1e-09 }
  0xbf   :  { %v376_v63 = vsub.f32 %v397_v59, %v399_v62 }
  0xc0   :  { %381 = vst [vmem:[%s714_s7] sm:$0xff] %v379_v61 }
  0xc1   :  { %v378_v1 = vmul.f32 0.5, %v376_v63 }
  0xc3   :  { %v380_v2 = vmax.f32 %v378_v1, 1e-09 }
  0xc5   :  { %382 = vst [vmem:[%s714_s7 + $0x8] sm:$0xff] %v380_v2 }

</bundles_post_ra>
